<compile_context>
chip_gen: v5e
topology: v5e:2x2
jax: 0.10.0
libtpu: 0.0.40
codegen_flags: <defaults>
</compile_context>

<pallas_src>
import math

import jax
import jax.numpy as jnp
from jax.experimental import pallas as pl
from jax.experimental.pallas import tpu as pltpu


USE_BF16_MXU = True          # bf16 MXU operands (split-bf16 DFT matrices), f32 accumulation.


def _round_up(x, m):
    return (x + m - 1) // m * m


def _vmem_capacity_bytes():
    """Physical VMEM per TensorCore (generation-aware), with a conservative fallback."""
    try:
        info = pltpu.get_tpu_info()
        cap = getattr(info, "vmem_capacity_bytes", None)
        if cap:
            return int(cap)
    except Exception:
        pass
    return 64 * 1024 * 1024   # v7x per-TC value: the tightest of the supported chips.


def _pick_row_tile(per_row_bytes, fixed_bytes, cap):
    """Largest row tile whose double-buffered pipeline footprint fits a VMEM budget."""
    budget = min(int(0.45 * cap), 40 << 20) - fixed_bytes
    for tm in (1024, 512, 256, 128):
        if tm * per_row_bytes <= budget:
            return tm
    return 128


# ----------------------------------------------------------------------------
# Fused QKV projection kernel: n tensors share one weight; output written in
# time-major (T, B*Dp) layout so it feeds the autocorr kernel with no transposes.
# ----------------------------------------------------------------------------
def _make_proj_kernel(n):
    def kernel(*refs):
        wt = refs[n][...]            # (d_in, Dp)   VMEM-resident (constant index map)
        bias = refs[n + 1][...]      # (1, Dp)
        for t in range(n):
            x = refs[t][0]           # (TM, d_in)
            acc = jnp.dot(x, wt, preferred_element_type=jnp.float32) + bias
            refs[n + 2 + t][...] = acc.astype(refs[n + 2 + t].dtype)
    return kernel


def project_time_major(xs, wt_pad, b_pad, out_dtype, cap):
    """xs: list of (B, T, d_in) arrays (same shape).  Returns list of (T, B*Dp) arrays,
    out[t, b*Dp + j] = (xs[i][b, t] @ W)[j] + bias[j]  (j >= d_out columns are zero)."""
    n = len(xs)
    B, T, d_in = xs[0].shape
    Dp = wt_pad.shape[1]
    in_bytes = jnp.dtype(xs[0].dtype).itemsize
    out_bytes = jnp.dtype(out_dtype).itemsize

    per_row = n * (2 * d_in * in_bytes + 2 * Dp * out_bytes)   # double-buffered in + out rows
    fixed = 2 * (d_in * Dp * 4 + Dp * 4)                       # resident weight + bias (x2 bufs)
    tm = min(_pick_row_tile(per_row, fixed, cap), _round_up(T, 8))
    Tp = _round_up(T, tm)
    if Tp != T:
        xs = [jnp.pad(x, ((0, 0), (0, Tp - T), (0, 0))) for x in xs]

    in_specs = ([pl.BlockSpec((1, tm, d_in), lambda b, lt: (b, lt, 0))] * n +
                [pl.BlockSpec((d_in, Dp), lambda b, lt: (0, 0)),
                 pl.BlockSpec((1, Dp), lambda b, lt: (0, 0))])
    out_specs = [pl.BlockSpec((tm, Dp), lambda b, lt: (lt, b))] * n
    out_shape = [jax.ShapeDtypeStruct((Tp, B * Dp), out_dtype)] * n

    outs = pl.pallas_call(
        _make_proj_kernel(n),
        grid=(B, Tp // tm),
        in_specs=in_specs,
        out_specs=out_specs,
        out_shape=out_shape,
        compiler_params=pltpu.CompilerParams(
            dimension_semantics=("parallel", "parallel"),
            vmem_limit_bytes=int(min(48 << 20, 0.7 * cap))),
    )(*xs, wt_pad, b_pad)
    if not isinstance(outs, (list, tuple)):
        outs = (outs,)
    return [o[:T] for o in outs]


# ----------------------------------------------------------------------------
# Row-tiled linear kernel (y = x @ W^T + b) used for the final fc projection.
# ----------------------------------------------------------------------------
def _linear_kernel(x_ref, wt_ref, b_ref, o_ref):
    acc = jnp.dot(x_ref[...], wt_ref[...], preferred_element_type=jnp.float32)
    o_ref[...] = (acc + b_ref[...]).astype(o_ref.dtype)


def linear_rows(x, wt, b, cap):
    """x: (N, d_in), wt: (d_in, d_out) pre-transposed, b: (d_out,)."""
    N, d_in = x.shape
    d_out = wt.shape[1]
    in_bytes = jnp.dtype(x.dtype).itemsize
    per_row = 2 * d_in * in_bytes + 2 * d_out * 4
    fixed = 2 * (d_in * d_out * 4 + d_out * 4)
    tm = min(_pick_row_tile(per_row, fixed, cap), _round_up(N, 8))
    Np = _round_up(N, tm)
    if Np != N:
        x = jnp.pad(x, ((0, Np - N), (0, 0)))
    out = pl.pallas_call(
        _linear_kernel,
        grid=(Np // tm,),
        in_specs=[pl.BlockSpec((tm, d_in), lambda i: (i, 0)),
                  pl.BlockSpec((d_in, d_out), lambda i: (0, 0)),   # weight stays resident
                  pl.BlockSpec((1, d_out), lambda i: (0, 0))],
        out_specs=pl.BlockSpec((tm, d_out), lambda i: (i, 0)),
        out_shape=jax.ShapeDtypeStruct((Np, d_out), jnp.float32),
        compiler_params=pltpu.CompilerParams(
            dimension_semantics=("parallel",),
            vmem_limit_bytes=int(min(48 << 20, 0.7 * cap))),
    )(x, wt, b.reshape(1, d_out))
    return out[:N]


# ----------------------------------------------------------------------------
# Auto-correlation kernel (per channel-tile).  Data refs are (L, C_TILE): time on
# sublanes, channels on lanes.  Correlation + delay aggregation via half-spectrum
# (rfft-style) DFT matmuls with stacked real/imag parts.
# ----------------------------------------------------------------------------
def _make_autocorr_kernel(L, Fp, top_k, use_bf16):
    inv_L = 1.0 / float(L)
    n_mat = 4 if use_bf16 else 2

    def kernel(*refs):
        mats = [refs[i][...] for i in range(n_mat)]
        q_ref, k_ref, v_ref, o_ref = refs[n_mat:]

        if use_bf16:
            fh, fl, ih, il = mats        # split-bf16 forward / inverse DFT matrices

            def fwd(x):                  # (L, CT) -> stacked (2Fp, CT) = [Xr; Xi]
                xb = x.astype(jnp.bfloat16)
                return (jnp.dot(fh, xb, preferred_element_type=jnp.float32) +
                        jnp.dot(fl, xb, preferred_element_type=jnp.float32))

            def inv(xs):                 # stacked (2Fp, CT) -> (L, CT), includes 1/L
                xb = xs.astype(jnp.bfloat16)
                return (jnp.dot(ih, xb, preferred_element_type=jnp.float32) +
                        jnp.dot(il, xb, preferred_element_type=jnp.float32)) * inv_L
        else:
            fm, im = mats

            def fwd(x):
                return jnp.dot(fm, x.astype(jnp.float32),
                               preferred_element_type=jnp.float32)

            def inv(xs):
                return jnp.dot(im, xs.astype(jnp.float32),
                               preferred_element_type=jnp.float32) * inv_L

        q = q_ref[...]
        k = k_ref[...]
        v = v_ref[...]

        # corr[tau, c] = sum_t q[t,c] * k[(t-tau)%L, c]
        #             == Re(irfft(rfft(q) * conj(rfft(k))))[tau]
        qs = fwd(q)                                  # (2Fp, CT)  [Qr; Qi]
        ks = fwd(k)
        qr, qi = qs[:Fp], qs[Fp:]
        kr, ki = ks[:Fp], ks[Fp:]
        rs = jnp.concatenate([qr * kr + qi * ki, qi * kr - qr * ki], axis=0)
        corr = inv(rs)                               # (L, CT), f32 (softmax temperature kept)

        # per-channel top-k over the delay (sublane) axis + softmax over those k values.
        # TODO(synk): exact torch.topk tie-breaking for duplicate maxima is not reproduced.
        NEG = jnp.float32(-1e30)
        vals = corr
        top_vals = []
        for _ in range(top_k):                       # top_k = int(factor*log(L)) — small
            m = jnp.max(vals, axis=0, keepdims=True)            # (1, CT) cross-sublane (XLU)
            top_vals.append(m)
            vals = jnp.where(vals >= m, NEG, vals)
        tops = jnp.concatenate(top_vals, axis=0)                # (top_k, CT)
        m_top = tops[0:1]
        thresh = tops[top_k - 1:top_k]
        denom = jnp.sum(jnp.exp(tops - m_top), axis=0, keepdims=True)
        # softmax weights placed at their delays; zero elsewhere
        w = jnp.where(corr >= thresh, jnp.exp(corr - m_top), 0.0) / denom

        # delays_agg[l, c] = sum_tau w[tau,c] * v[(l+tau)%L, c]
        #                 == Re(irfft(rfft(v) * conj(rfft(w))))[l]
        vs = fwd(v)
        ws = fwd(w)
        vr, vi = vs[:Fp], vs[Fp:]
        wr, wi = ws[:Fp], ws[Fp:]
        as_ = jnp.concatenate([vr * wr + vi * wi, vi * wr - vr * wi], axis=0)
        agg = inv(as_)
        o_ref[...] = agg.astype(o_ref.dtype)

    return kernel


def _autocorr_tile_bytes(L, Fp, ct, in_bytes):
    """Per-channel-tile VMEM footprint: double-buffered in/out pipeline + live intermediates."""
    pipe = 3 * 2 * L * ct * in_bytes + 2 * L * ct * 4
    interm = (8 * (2 * Fp) + 8 * L) * ct * 4        # generous: stacked spectra, corr, w, agg
    return pipe + interm


def _pick_c_tile(c_pad, L, Fp, in_bytes, mat_bytes, cap):
    """Largest channel tile that fits the generation-aware VMEM budget; prefers >= 2 tiles
    so the 'parallel' channel axis can shard across TensorCores (v7x megacore)."""
    budget = min(int(0.6 * cap), 96 << 20) - mat_bytes
    cands = [c for c in (1024, 512, 256, 128) if c_pad % c == 0]
    if not cands:
        cands = [128]
    for want_multi in (True, False):
        for c in cands:
            if want_multi and c_pad // c < 2:
                continue
            if _autocorr_tile_bytes(L, Fp, c, in_bytes) <= budget:
                return c
    return cands[-1]


def auto_correlation(q_tm, k_tm, v_tm, L, top_k, use_bf16, cap):
    """q/k/v_tm: (L, C_pad) time-major, lane-dense. Returns delay aggregation, same layout."""
    C_pad = q_tm.shape[1]

    # Half-spectrum (rfft) DFT matrices with exact mod-L argument reduction.
    F = L // 2 + 1                      # L even (asserted by caller)
    Fp = _round_up(F, 8)                # sublane-pad; padded bins are zero rows/cols
    ti = jnp.arange(L, dtype=jnp.int32)
    fi = jnp.arange(Fp, dtype=jnp.int32)
    idx = (fi[:, None] * ti[None, :]) % L
    ang = (2.0 * math.pi / L) * idx.astype(jnp.float32)
    valid = (fi < F).astype(jnp.float32)[:, None]
    cosm = jnp.cos(ang) * valid                                   # (Fp, L)
    sinm = jnp.sin(ang) * valid
    fwd = jnp.concatenate([cosm, -sinm], axis=0)                  # (2Fp, L): X = fwd @ x
    wgt = jnp.where((fi == 0) | (fi == L // 2), 1.0, 2.0).astype(jnp.float32)
    wgt = wgt * (fi < F).astype(jnp.float32)                      # rfft bin weights 1,2,...,2,1
    inv = jnp.concatenate([(cosm * wgt[:, None]).T,
                           -(sinm * wgt[:, None]).T], axis=1)     # (L, 2Fp): x = (1/L) inv @ X

    if use_bf16:
        mats = []
        for m in (fwd, inv):
            hi = m.astype(jnp.bfloat16)
            lo = (m - hi.astype(jnp.float32)).astype(jnp.bfloat16)   # split-bf16: keeps precision
            mats.extend([hi, lo])
    else:
        mats = [fwd, inv]

    in_bytes = jnp.dtype(q_tm.dtype).itemsize
    mat_bytes = sum(2 * m.size * jnp.dtype(m.dtype).itemsize for m in mats)   # x2 buffers
    c_tile = _pick_c_tile(C_pad, L, Fp, in_bytes, mat_bytes, cap)
    footprint = mat_bytes + _autocorr_tile_bytes(L, Fp, c_tile, in_bytes)
    vmem_limit = int(min(max(footprint + (8 << 20), 32 << 20), 0.85 * cap))

    mat_specs = [pl.BlockSpec(m.shape, lambda c: (0, 0)) for m in mats]   # resident, constant
    data_spec = pl.BlockSpec((L, c_tile), lambda c: (0, c))

    return pl.pallas_call(
        _make_autocorr_kernel(L, Fp, top_k, use_bf16),
        grid=(C_pad // c_tile,),
        in_specs=mat_specs + [data_spec, data_spec, data_spec],
        out_specs=pl.BlockSpec((L, c_tile), lambda c: (0, c)),
        out_shape=jax.ShapeDtypeStruct((L, C_pad), jnp.float32),
        compiler_params=pltpu.CompilerParams(
            dimension_semantics=("parallel",),
            vmem_limit_bytes=vmem_limit),
    )(*mats, q_tm, k_tm, v_tm)


# ----------------------------------------------------------------------------
# Full AutoCorrelationLayer forward
# ----------------------------------------------------------------------------
def auto_correlation_layer(Qin, Kin, Vin, params, n_heads, factor, use_bf16=USE_BF16_MXU):
    B, L, d_model = Qin.shape
    S = Kin.shape[1]
    H = n_heads
    dk = d_model // H
    d_out = H * dk
    assert L % 2 == 0, "even sequence length assumed (matches torch irfft default length)"

    cap = _vmem_capacity_bytes()

    Wq, bq = params["W_Q"]
    Wfc, bfc = params["fc"]

    # Pre-transpose & zero-pad the shared projection weight ONCE (lane dim -> multiple of 128).
    Dp = _round_up(d_out, 128)
    Wq_t = jnp.pad(jnp.transpose(Wq), ((0, 0), (0, Dp - d_out)))       # (d_model, Dp)
    bq_p = jnp.pad(bq, (0, Dp - d_out)).reshape(1, Dp)

    proj_dtype = jnp.bfloat16 if use_bf16 else jnp.float32

    # Fused Q/K/V projection with W_Q (the reference, verbatim, uses W_Q for all three),
    # written directly in time-major (T, B*Dp) layout.
    if S >= L:
        q_tm, k_tm, v_tm = project_time_major(
            [Qin, Kin[:, :L], Vin[:, :L]], Wq_t, bq_p, proj_dtype, cap)
    else:
        (q_tm,) = project_time_major([Qin], Wq_t, bq_p, proj_dtype, cap)
        k_tm, v_tm = project_time_major([Kin, Vin], Wq_t, bq_p, proj_dtype, cap)
        pad = ((0, L - S), (0, 0))                 # reference zero-pads AFTER projection
        k_tm = jnp.pad(k_tm, pad)
        v_tm = jnp.pad(v_tm, pad)

    top_k = int(factor * math.log(L))
    top_k = max(1, min(top_k, L))

    agg_lc = auto_correlation(q_tm, k_tm, v_tm, L, top_k, use_bf16, cap)   # (L, B*Dp) f32

    # Back to the reference's contiguous (B, H, L, dk), then its raw reshape
    # (no head un-transpose — reproduced verbatim from the PyTorch module).
    agg = agg_lc.reshape(L, B, Dp)[:, :, :d_out].reshape(L, B, H, dk)
    agg = jnp.transpose(agg, (1, 2, 0, 3))                             # (B, H, L, dk)
    fc_in = agg.reshape(B * L, H * dk)

    Wfc_t = jnp.transpose(Wfc)                                         # (H*dk, d_model)
    out = linear_rows(fc_in, Wfc_t, bfc, cap)                          # (B*L, d_model)
    return out.reshape(B, L, d_model)


# ----------------------------------------------------------------------------
# Parameter init (deterministic, PyTorch-Linear-style uniform bounds)
# ----------------------------------------------------------------------------
def init_params(key, d_model, n_heads):
    d_k = d_model // n_heads

    def lin_init(k, fan_out, fan_in):
        kw, kb = jax.random.split(k)
        bound = 1.0 / math.sqrt(fan_in)
        w = jax.random.uniform(kw, (fan_out, fan_in), jnp.float32, -bound, bound)
        b = jax.random.uniform(kb, (fan_out,), jnp.float32, -bound, bound)
        return w, b

    k1, k2, k3, k4 = jax.random.split(key, 4)
    return {
        "W_Q": lin_init(k1, d_k * n_heads, d_model),
        "W_K": lin_init(k2, d_k * n_heads, d_model),   # created (as in __init__) but unused
        "W_V": lin_init(k3, d_k * n_heads, d_model),   # created (as in __init__) but unused
        "fc": lin_init(k4, d_model, n_heads * d_k),
    }


if __name__ == "__main__":
    B, L, S = 2, 8, 8
    d_model, n_heads, factor = 32, 4, 1

    ikey = jax.random.PRNGKey(0)
    kq, kk, kv = jax.random.split(ikey, 3)
    Q = jax.random.normal(kq, (B, L, d_model), jnp.float32)
    K = jax.random.normal(kk, (B, S, d_model), jnp.float32)
    V = jax.random.normal(kv, (B, S, d_model), jnp.float32)

    params = init_params(jax.random.PRNGKey(42), d_model, n_heads)

    out = auto_correlation_layer(Q, K, V, params, n_heads, factor)
    out = jax.block_until_ready(out)

    assert out.shape == (B, L, d_model)
    assert jnp.all(jnp.isfinite(out))
    print("KERNEL_OK")
</pallas_src>

<mosaic_0001>
module attributes {stable_mosaic.version = 11 : i64} {
  func.func @kernel(%arg0: i32, %arg1: i32, %arg2: memref<1x8x32xf32, #tpu.memory_space<vmem>>, %arg3: memref<1x8x32xf32, #tpu.memory_space<vmem>>, %arg4: memref<1x8x32xf32, #tpu.memory_space<vmem>>, %arg5: memref<32x128xf32, #tpu.memory_space<vmem>>, %arg6: memref<1x128xf32, #tpu.memory_space<vmem>>, %arg7: memref<8x128xbf16, #tpu.memory_space<vmem>>, %arg8: memref<8x128xbf16, #tpu.memory_space<vmem>>, %arg9: memref<8x128xbf16, #tpu.memory_space<vmem>>) attributes {dimension_semantics = [#tpu.dimension_semantics<parallel>, #tpu.dimension_semantics<parallel>], iteration_bounds = array<i64: 2, 1>, scalar_prefetch = 0 : i64, scratch_operands = 0 : i64, tpu.core_type = #tpu.core_type<tc>, window_params = [{transform_indices = @transform_0, window_bounds = array<i64: 1, 8, 32>}, {transform_indices = @transform_1, window_bounds = array<i64: 1, 8, 32>}, {transform_indices = @transform_2, window_bounds = array<i64: 1, 8, 32>}, {pipeline_mode = #tpu.pipeline_mode<synchronous>, transform_indices = @transform_3, window_bounds = array<i64: 32, 128>}, {pipeline_mode = #tpu.pipeline_mode<synchronous>, transform_indices = @transform_4, window_bounds = array<i64: 1, 128>}, {transform_indices = @transform_5, window_bounds = array<i64: 8, 128>}, {transform_indices = @transform_6, window_bounds = array<i64: 8, 128>}, {transform_indices = @transform_7, window_bounds = array<i64: 8, 128>}]} {
    %c0 = arith.constant 0 : index
    %c0_0 = arith.constant 0 : index
    %0 = vector.load %arg5[%c0, %c0_0] : memref<32x128xf32, #tpu.memory_space<vmem>>, vector<32x128xf32>
    %c0_1 = arith.constant 0 : index
    %c0_2 = arith.constant 0 : index
    %1 = vector.load %arg6[%c0_1, %c0_2] : memref<1x128xf32, #tpu.memory_space<vmem>>, vector<1x128xf32>
    %c0_3 = arith.constant 0 : index
    %c0_4 = arith.constant 0 : index
    %c0_5 = arith.constant 0 : index
    %2 = vector.load %arg2[%c0_3, %c0_4, %c0_5] : memref<1x8x32xf32, #tpu.memory_space<vmem>>, vector<1x8x32xf32>
    %3 = vector.shape_cast %2 : vector<1x8x32xf32> to vector<8x32xf32>
    %cst = arith.constant dense<0.000000e+00> : vector<8x128xf32>
    %4 = tpu.matmul %3, %0, %cst {dimension_numbers = #tpu.dot_dimension_numbers<[1], [0], [0], [1], [0, 0, 1, 1], [], []>} : vector<8x32xf32>, vector<32x128xf32>, vector<8x128xf32> -> vector<8x128xf32>
    %5 = vector.broadcast %1 : vector<1x128xf32> to vector<8x128xf32>
    %6 = arith.addf %4, %5 : vector<8x128xf32>
    %7 = arith.truncf %6 : vector<8x128xf32> to vector<8x128xbf16>
    %c0_6 = arith.constant 0 : index
    %c0_7 = arith.constant 0 : index
    %8 = vector.load %arg7[%c0_6, %c0_7] : memref<8x128xbf16, #tpu.memory_space<vmem>>, vector<8x128xbf16>
    tpu.vector_store %arg7[%c0_6, %c0_7], %7 {strides = array<i32>} : memref<8x128xbf16, #tpu.memory_space<vmem>>, vector<8x128xbf16>,
    %c0_8 = arith.constant 0 : index
    %c0_9 = arith.constant 0 : index
    %c0_10 = arith.constant 0 : index
    %9 = vector.load %arg3[%c0_8, %c0_9, %c0_10] : memref<1x8x32xf32, #tpu.memory_space<vmem>>, vector<1x8x32xf32>
    %10 = vector.shape_cast %9 : vector<1x8x32xf32> to vector<8x32xf32>
    %cst_11 = arith.constant dense<0.000000e+00> : vector<8x128xf32>
    %11 = tpu.matmul %10, %0, %cst_11 {dimension_numbers = #tpu.dot_dimension_numbers<[1], [0], [0], [1], [0, 0, 1, 1], [], []>} : vector<8x32xf32>, vector<32x128xf32>, vector<8x128xf32> -> vector<8x128xf32>
    %12 = vector.broadcast %1 : vector<1x128xf32> to vector<8x128xf32>
    %13 = arith.addf %11, %12 : vector<8x128xf32>
    %14 = arith.truncf %13 : vector<8x128xf32> to vector<8x128xbf16>
    %c0_12 = arith.constant 0 : index
    %c0_13 = arith.constant 0 : index
    %15 = vector.load %arg8[%c0_12, %c0_13] : memref<8x128xbf16, #tpu.memory_space<vmem>>, vector<8x128xbf16>
    tpu.vector_store %arg8[%c0_12, %c0_13], %14 {strides = array<i32>} : memref<8x128xbf16, #tpu.memory_space<vmem>>, vector<8x128xbf16>,
    %c0_14 = arith.constant 0 : index
    %c0_15 = arith.constant 0 : index
    %c0_16 = arith.constant 0 : index
    %16 = vector.load %arg4[%c0_14, %c0_15, %c0_16] : memref<1x8x32xf32, #tpu.memory_space<vmem>>, vector<1x8x32xf32>
    %17 = vector.shape_cast %16 : vector<1x8x32xf32> to vector<8x32xf32>
    %cst_17 = arith.constant dense<0.000000e+00> : vector<8x128xf32>
    %18 = tpu.matmul %17, %0, %cst_17 {dimension_numbers = #tpu.dot_dimension_numbers<[1], [0], [0], [1], [0, 0, 1, 1], [], []>} : vector<8x32xf32>, vector<32x128xf32>, vector<8x128xf32> -> vector<8x128xf32>
    %19 = vector.broadcast %1 : vector<1x128xf32> to vector<8x128xf32>
    %20 = arith.addf %18, %19 : vector<8x128xf32>
    %21 = arith.truncf %20 : vector<8x128xf32> to vector<8x128xbf16>
    %c0_18 = arith.constant 0 : index
    %c0_19 = arith.constant 0 : index
    %22 = vector.load %arg9[%c0_18, %c0_19] : memref<8x128xbf16, #tpu.memory_space<vmem>>, vector<8x128xbf16>
    tpu.vector_store %arg9[%c0_18, %c0_19], %21 {strides = array<i32>} : memref<8x128xbf16, #tpu.memory_space<vmem>>, vector<8x128xbf16>,
    return
  }
  func.func @transform_0(%arg0: i32, %arg1: i32) -> (i32, i32, i32) {
    %c0_i32 = arith.constant 0 : i32
    %c0_i32_0 = arith.constant 0 : i32
    return %arg0, %arg1, %c0_i32 : i32, i32, i32
  }
  func.func @transform_1(%arg0: i32, %arg1: i32) -> (i32, i32, i32) {
    %c0_i32 = arith.constant 0 : i32
    %c0_i32_0 = arith.constant 0 : i32
    return %arg0, %arg1, %c0_i32 : i32, i32, i32
  }
  func.func @transform_2(%arg0: i32, %arg1: i32) -> (i32, i32, i32) {
    %c0_i32 = arith.constant 0 : i32
    %c0_i32_0 = arith.constant 0 : i32
    return %arg0, %arg1, %c0_i32 : i32, i32, i32
  }
  func.func @transform_3(%arg0: i32, %arg1: i32) -> (i32, i32) {
    %c0_i32 = arith.constant 0 : i32
    %c0_i32_0 = arith.constant 0 : i32
    %c0_i32_1 = arith.constant 0 : i32
    return %c0_i32, %c0_i32_0 : i32, i32
  }
  func.func @transform_4(%arg0: i32, %arg1: i32) -> (i32, i32) {
    %c0_i32 = arith.constant 0 : i32
    %c0_i32_0 = arith.constant 0 : i32
    %c0_i32_1 = arith.constant 0 : i32
    return %c0_i32, %c0_i32_0 : i32, i32
  }
  func.func @transform_5(%arg0: i32, %arg1: i32) -> (i32, i32) {
    %c0_i32 = arith.constant 0 : i32
    return %arg1, %arg0 : i32, i32
  }
  func.func @transform_6(%arg0: i32, %arg1: i32) -> (i32, i32) {
    %c0_i32 = arith.constant 0 : i32
    return %arg1, %arg0 : i32, i32
  }
  func.func @transform_7(%arg0: i32, %arg1: i32) -> (i32, i32) {
    %c0_i32 = arith.constant 0 : i32
    return %arg1, %arg0 : i32, i32
  }
}

</mosaic_0001>

<bundles_post_ra>
// kernel: tpu_custom_call.1
= control target key start
LH: loop header
LB: loop body
LE: loop exit
PB: predicated region body
PF: predicated region fallthrough
CT: control target
= control target key end

     0   :  { %s1493_s0 = inlined_call_operand.hbm [shape: f32[2,8,32], index: 0, kind: input, shape index: {}]   ;;  %s1494_s1 = inlined_call_operand.hbm [shape: f32[2,8,32], index: 1, kind: input, shape index: {}]   ;;  %s1495_s2 = inlined_call_operand.hbm [shape: f32[2,8,32], index: 2, kind: input, shape index: {}]   ;;  %s1496_s3 = inlined_call_operand.hbm [shape: f32[32,128], index: 3, kind: input, shape index: {}]   ;;  %s1497_s4 = inlined_call_operand.vmem [shape: f32[1,128], index: 4, kind: input, shape index: {}]   ;;  %s1498_s5 = inlined_call_operand.hbm [shape: bf16[8,256], index: 5, kind: output, shape index: {0}]   ;;  %s1499_s6 = inlined_call_operand.hbm [shape: bf16[8,256], index: 6, kind: output, shape index: {1}]   ;;  %s1500_s7 = inlined_call_operand.hbm [shape: bf16[8,256], index: 7, kind: output, shape index: {2}]  }
   0x1   :  { %1511 = sst [smem:[#allocation26_spill]] %s1494_s1 }
   0x2   :  { %1512 = sst [smem:[#allocation27_spill]] %s1496_s3 }
   0x3   :  { %13 = vsyncpa [#allocation3], 0 }
   0x4   :  { %15 = vsyncpa [#allocation3 + $0x1], 0 }
   0x5   :  { %16 = vsyncpa [#allocation6], 0 }
   0x6   :  { %18 = vsyncpa [#allocation6 + $0x1], 0 }
   0x7   :  { %19 = vsyncpa [#allocation9], 0 }
   0x8   :  { %20 = vsyncpa [#allocation4], 0 }
   0x9   :  { %22 = vsyncpa [#allocation4 + $0x1], 0 }
   0xa   :  { %23 = vsyncpa [#allocation12], 0 }
   0xb   :  { %25 = vsyncpa [#allocation12 + $0x1], 0  ;;  %s1224_s24 = smov 0   ;;  %s1226_s25 = smov 0  }
   0xc   :  { %s1228_s26 = smov 0   ;;  %s1230_s27 = smov 0  }
   0xd   :  { %s1232_s28 = smov 0   ;;  %s1234_s29 = smov 0  }
   0xe LB: > { %1513 = sst [smem:[#allocation19_spill]] %s1159_s24  ;;  %s1255_s30 = sadd.s32 4294967295, %s1179_s29   ;;  %s1179_s29 = sphi %s1234_s29, %s31_s29   ;;  %s1175_s28 = sphi %s1232_s28, %s1536_s28   ;;  %s1171_s27 = sphi %s1230_s27, %s1535_s27   ;;  %s1167_s26 = sphi %s1228_s26, %s1539_s26   ;;  %s1163_s25 = sphi %s1226_s25, %s1538_s25   ;;  %s1159_s24 = sphi %s1224_s24, %s1537_s24  }
   0xf   : > { %1514 = sst [smem:[#allocation20_spill]] %s1175_s28  ;;  %s1501_s8 = sadd.s32 4294967294, %s1179_s29  }
  0x10   : > { %1515 = sst [smem:[#allocation21_spill]] %s1179_s29  ;;  %s43_s9 = sadd.s32 1, %s1175_s28 }
  0x11   : > { %s52_s10 = sadd.s32 1, %s1167_s26  ;;  %p45_p0 = scmp.ge.s32.totalorder %s43_s9, 2 }
  0x12   : > { %p59_p1 = scmp.ne.s32.totalorder %s1167_s26, %s1163_s25  ;;  %p60_p2 = scmp.eq.s32.totalorder %s1179_s29, 0 }
  0x13   : > { %p65_p3 = scmp.ne.s32.totalorder %s1163_s25, %s1159_s24  ;;  %s1541_s9 = smov (%p45_p0, %s43_s9), 0 }
  0x14   : > { %1516 = sst [smem:[#allocation22_spill]] %s1541_s9  ;;  %p1267_p4 = por %p60_p2, %p59_p1 }
  0x15   : > { %p189_p5 = scmp.eq.s32.totalorder %s1255_s30, 1  ;;  %s47_s12 = ssub.s32 %s1175_s28, %s1541_s9 }
  0x16   : > { %p195_p6 = scmp.eq.s32.totalorder %s1501_s8, 1  ;;  %p50_p7 = scmp.eq.s32.totalorder %s47_s12, 0 }
  0x17   : > { %p1276_p8 = por %p189_p5, %p59_p1  ;;  %p787_p10 = scmp.ge.s32.totalorder %s1179_s29, 2 }
  0x18   : > { %p1283_p9 = por %p195_p6, %p65_p3  ;;  %p854_p11 = scmp.lt.s32.totalorder %s1179_s29, 2 }
  0x19   : > { %s1518_s13 = scalar_select %p1276_p8, 1, 0 }
  0x1a   : > { %s1520_s14 = scalar_select %p1283_p9, 1, 0 }
  0x1b   : > { %1519 = sst [smem:[#allocation23_spill]] %s1518_s13  ;;  %s1502_s16 = sand.u32 1, %s1167_s26  }
  0x1c   : > { %1521 = sst [smem:[#allocation24_spill]] %s1520_s14  ;;  %s1294_s17 = sshll.u32 %s1175_s28, 3 }
  0x1d   : > { %s1288_s15 = scalar_select %p50_p7, %s1167_s26, %s52_s10  }
  0x1e   : > { %s1298_s18 = sshll.u32 %s1502_s16, 3  ;;  %p1302_p12 = pnand %p854_p11, %p1267_p4 }
  0x1f   : > { %1522 = sst [smem:[#allocation25_spill]] %s1288_s15  ;;  %s308_s20 = sand.u32 1, %s1179_s29  }
  0x20   : > { %s1524_s1 = sld [smem:[#allocation26_spill]]  ;;  %s312_s10 = scalar_lea.vmem [#allocation5], %s1298_s18 }
  0x21   : > { %s321_s12 = sshll.u32 %s312_s10, 4  ;;  %s1312_s16 = scalar_lea.sflag [#allocation6], %s308_s20  ;;  %s322_s12 = int_to_ptr.vmem [resolvable:$true] %s321_s12 }
  0x22   : > { %p66_p13 = scmp.eq.s32.totalorder %s1255_s30, 0  ;;  %p785_p0 = scmp.ge.s32.totalorder %s1179_s29, 1 }
  0x23   : > { %p258_p1 = scmp.lt.s32.totalorder %s1179_s29, 3  ;;  %s1526_s3 = sld [smem:[#allocation27_spill]] }
  0x24   : > { %p1325_p2 = por %p66_p13, %p65_p3  ;;  %s297_s22 = scalar_lea.hbm %s1493_s0, %s1294_s17 }
  0x25   : > { %p1332_p4 = pnand %p785_p0, %p258_p1  ;;  %s1183_s9 = smov 8  }
  0x26   : > { %s317_s23 = scalar_lea.hbm %s1524_s1, %s1294_s17  ;;  %s299_s1 = sshll.u32 %s297_s22, 4  ;;  %s300_s1 = int_to_ptr.hbm [resolvable:$true] %s299_s1 }
  0x27   : > { %s319_s8 = sshll.u32 %s317_s23, 4  ;;  %p829_p5 = pneg %p1332_p4  ;;  %s320_s8 = int_to_ptr.hbm [resolvable:$true] %s319_s8 }
  0x28   : > { %839 = dma.hbm_to_vmem [thread:$0]  (!%p1302_p12), %s320_s8, 128, %s322_s12, %s1312_s16  }
  0x29   : > { %s269_s23 = sshll.u32 %s1526_s3, 4  ;;  %s1181_s8 = smov [#allocation8]   ;;  %s270_s23 = int_to_ptr.hbm [resolvable:$true] %s269_s23 }
  0x2a   : > { %s271_s10 = sshll.u32 %s1181_s8, 4  ;;  %p830_p3 = pnand %p829_p5, %p66_p13  ;;  %s272_s10 = int_to_ptr.vmem [resolvable:$true] %s271_s10 }
  0x2b   : > { %s1182_s3 = smov 128   ;;  %s292_s28 = scalar_lea.vmem [#allocation2], %s1298_s18 }
  0x2c   : > { %832 = dma.hbm_to_vmem [thread:$0]  (!%p830_p3), %s270_s23, 512, %s272_s10, [#allocation9], %s1182_s3, %s1182_s3, %s1183_s9  }
  0x2d   : > { %s301_s15 = sshll.u32 %s292_s28, 4  ;;  %s1528_s29 = sand.u32 1, %s1167_s26   ;;  %s302_s15 = int_to_ptr.vmem [resolvable:$true] %s301_s15 }
  0x2e   : > { %s289_s14 = scalar_lea.sflag [#allocation3], %s1528_s29  ;;  %s337_s13 = scalar_lea.hbm %s1495_s2, %s1294_s17 }
  0x2f   : > { %836 = dma.hbm_to_vmem [thread:$0]  (!%p1302_p12), %s300_s1, 128, %s302_s15, %s289_s14  }
  0x30   : > { %s332_s12 = scalar_lea.vmem [#allocation7], %s1298_s18  ;;  %s339_s22 = sshll.u32 %s337_s13, 4  ;;  %s340_s22 = int_to_ptr.hbm [resolvable:$true] %s339_s22 }
  0x31   : > { %s341_s21 = sshll.u32 %s332_s12, 4  ;;  %350 = sbr.rel (%p1332_p4) target bundleno = 227 (0xe3), region = 40  ;;  %s342_s21 = int_to_ptr.vmem [resolvable:$true] %s341_s21 }
  0x32   : > { %842 = dma.hbm_to_vmem [thread:$0]  (!%p1302_p12), %s340_s22, 128, %s342_s21, %s1312_s16  }
  0x33   : > { %s1360_s3 = sand.u32 (!%p1332_p4), 1, %s1163_s25  }
  0x34   : > { %s1363_s1 = sshll.u32 (!%p1332_p4), %s1360_s3, 3  ;;  %s353_s24 = scalar_lea.sflag (!%p1332_p4), [#allocation3], %s1360_s3 }
  0x35   : > { %s356_s28 = scalar_lea.vmem (!%p1332_p4), [#allocation2], %s1363_s1 }
  0x36   : > { %1138 = dma.done.wait (%p1325_p2), %s353_s24, 128  }
  0x37   : > { %1140 = vsyncadd (%p1325_p2), %s353_s24, 4294967168  ;;  %s362_s29 = sand.u32 1, %s1255_s30   ;;  %s366_s13 = scalar_lea.vmem [#allocation5], %s1363_s1 }
  0x38   : > { %s363_s9 = scalar_lea.sflag [#allocation6], %s362_s29 }
  0x39   : > { %1142 = dma.done.wait (%p1325_p2), %s363_s9, 256  }
  0x3a   : > { %1144 = vsyncadd (%p1325_p2), %s363_s9, 4294967040  ;;  %s376_s14 = scalar_lea.vmem [#allocation7], %s1363_s1 }
  0x3b   : > { %1146 = dma.done.wait (%p66_p13), [#allocation9], 512  }
  0x3c   : > { %1148 = vsyncadd (%p66_p13), [#allocation9], 4294966784  ;;  %v436_v0 = vld [vmem:[#allocation8 + $0x18] sm:$0xff]  ;;  %v435_v1 = vld [vmem:[#allocation8 + $0x10] sm:$0xff]  ;;  %vm442_vm0 = vcmask 261120   ;;  %s1385_s15 = sshll.u32 %s1360_s3, 2 }
  0x3d   : > { %510 = vmatpush.msra.mxu2 %v436_v0  ;;  %484 = vmatpush.msra.mxu1 %v436_v0  ;;  %v434_v2 = vld [vmem:[#allocation8 + $0x8] sm:$0xff]  ;;  %v433_v3 = vld [vmem:[#allocation8] sm:$0xff]  ;;  %v494_v4 = vld [vmem:[%s376_s14] sm:$0xff]  ;;  %s808_s16 = sshll.u32 %s1171_s27, 2  ;;  %s425_s12 = scalar_lea.vmem [#allocation11], %s1385_s15 }
  0x3e   : > { %458 = vmatpush.msra.mxu0 %v436_v0  ;;  %v468_v5 = vld [vmem:[%s366_s13] sm:$0xff]  ;;  %v438_v6 = vld [vmem:[%s356_s28] sm:$0xff]  ;;  %s559_s23 = scalar_lea.hbm %s1499_s6, %s808_s16  ;;  %s543_s8 = scalar_lea.hbm %s1498_s5, %s808_s16 }
  0x3f   : > { %511 = vmatpush.msra.mxu2 %v435_v1  ;;  %485 = vmatpush.msra.mxu1 %v435_v1  ;;  %v908_v7 = vld [vmem:[%s1497_s4] ss:$0 sm:$0xff]  ;;  %s1398_s21 = sshll.u32 %s425_s12, 4  ;;  %s1400_s27 = sshll.u32 %s559_s23, 4  ;;  %s562_s21 = int_to_ptr.vmem [resolvable:$true] %s1398_s21  ;;  %s564_s27 = int_to_ptr.hbm [resolvable:$true] %s1400_s27 }
  0x40   : > { %459 = vmatpush.msra.mxu0 %v435_v1  ;;  %s418_s22 = scalar_lea.vmem [#allocation10], %s1385_s15  ;;  %s1405_s24 = sshll.u32 %s543_s8, 4  ;;  %s548_s24 = int_to_ptr.hbm [resolvable:$true] %s1405_s24 }
  0x41   : > { %512 = vmatpush.msra.mxu2 %v434_v2  ;;  %486 = vmatpush.msra.mxu1 %v434_v2  ;;  %s1403_s1 = sshll.u32 %s418_s22, 4  ;;  %s575_s13 = scalar_lea.hbm %s1500_s7, %s808_s16  ;;  %s546_s1 = int_to_ptr.vmem [resolvable:$true] %s1403_s1 }
  0x42   : > { %460 = vmatpush.msra.mxu0 %v434_v2  ;;  %s432_s17 = scalar_lea.vmem [#allocation13], %s1385_s15  ;;  %s1419_s19 = sshll.u32 %s575_s13, 4  ;;  %s580_s19 = int_to_ptr.hbm [resolvable:$true] %s1419_s19 }
  0x43   : > { %513 = vmatpush.msra.mxu2 %v433_v3  ;;  %487 = vmatpush.msra.mxu1 %v433_v3  ;;  %s1417_s18 = sshll.u32 %s432_s17, 4  ;;  %s1423_s11 = scalar_lea.sflag [#allocation12], %s362_s29  ;;  %s578_s18 = int_to_ptr.vmem [resolvable:$true] %s1417_s18 }
  0x44   : > { %804 = vmatmul.msk.f32.vlgmr.msra.gmra.mxu2 %vm442_vm0, %v494_v4  ;;  %461 = vmatpush.msra.mxu0 %v433_v3  ;;  %s1043_s16 = sshra.s32 %s564_s27, 4  ;;  %s1049_s8 = scalar_lea.hbm %s1499_s6, 8  ;;  %s1044_s16 = int_to_ptr.hbm [resolvable:$true] %s1043_s16 }
  0x45   : > { %803 = vmatmul.msk.f32.vlgmr.msra.gmra.mxu1 %vm442_vm0, %v468_v5  ;;  %802 = vmatmul.msk.f32.vlgmr.msra.gmra.mxu0 %vm442_vm0, %v438_v6  ;;  %s1045_s23 = scalar_lea.hbm %s1044_s16, 4  ;;  %p1050_p12 = scmp.lt.s32.totalorder %s1044_s16, %s1499_s6 }
  0x46   : > { %p1046_p6 = scmp.ne.s32.totalorder %s1044_s16, %s1045_s23  ;;  %p1051_p13 = scmp.lt.s32.totalorder %s1049_s8, %s1045_s23 }
  0x48   : > { %p1047_p7 = pnand %p1046_p6, %p1276_p8  ;;  %p1052_p0 = por %p1051_p13, %p1050_p12 }
  0x4a   : > { %p1048_p11 = pneg %p1047_p7 }
  0x4c   : > { %p1053_p1 = pnand %p1052_p0, %p1048_p11 }
  0xc2   : > { %v489_v8 = vpop.f32.mrf.mxu1  ;;  %v463_v9 = vpop.f32.mrf.mxu0 }
  0xc3   : > { %v490_v10 = vadd.f32 %v908_v7, %v489_v8  ;;  %v464_v11 = vadd.f32 %v908_v7, %v463_v9 }
  0xc5   : > { %v492_v12 = vpack.c.bf16 %v490_v10, %v490_v10  ;;  %v466_v13 = vpack.c.bf16 %v464_v11, %v464_v11 }
  0xc7   : > { %493 = vst [vmem:[%s425_s12] sm:$0xf] %v492_v12  ;;  %v515_v14 = vpop.f32.mrf.mxu2 }
  0xc8   : > { %467 = vst [vmem:[%s418_s22] sm:$0xf] %v466_v13  ;;  %v516_v15 = vadd.f32 %v908_v7, %v515_v14 }
  0xc9   : > { %1056 = shalt.err (!%p1053_p1)
}
  0xca   : > { %824 = dma.vmem_to_hbm [thread:$0]  (%p1276_p8), %s562_s21, 64, %s564_s27, %s1423_s11  }
  0xcb   : > { %s521_s30 = scalar_lea.sflag [#allocation4], %s1360_s3  ;;  %s1071_s29 = sshra.s32 %s548_s24, 4  ;;  %s1072_s29 = int_to_ptr.hbm [resolvable:$true] %s1071_s29 }
  0xcc   : > { %s1073_s22 = scalar_lea.hbm %s1072_s29, 4  ;;  %s1077_s16 = scalar_lea.hbm %s1498_s5, 8 }
  0xcd   : > { %p1074_p2 = scmp.ne.s32.totalorder %s1072_s29, %s1073_s22  ;;  %p1078_p3 = scmp.lt.s32.totalorder %s1072_s29, %s1498_s5 }
  0xce   : > { %p1079_p6 = scmp.lt.s32.totalorder %s1077_s16, %s1073_s22 }
  0xcf   : > { %p1075_p4 = pnand %p1074_p2, %p1276_p8 }
  0xd0   : > { %p1080_p7 = por %p1079_p6, %p1078_p3 }
  0xd1   : > { %p1076_p5 = pneg %p1075_p4 }
  0xd3   : > { %p1081_p11 = pnand %p1080_p7, %p1076_p5 }
  0xd5   : > { %1084 = shalt.err (!%p1081_p11)
}
  0xd6   : > { %823 = dma.vmem_to_hbm [thread:$0]  (%p1276_p8), %s546_s1, 64, %s548_s24, %s521_s30   ;;  %v518_v16 = vpack.c.bf16 %v516_v15, %v516_v15 }
  0xd7   : > { %s1099_s3 = sshra.s32 %s580_s19, 4  ;;  %s1105_s8 = scalar_lea.hbm %s1500_s7, 8  ;;  %s1100_s3 = int_to_ptr.hbm [resolvable:$true] %s1099_s3 }
  0xd8   : > { %519 = vst [vmem:[%s432_s17] sm:$0xf] %v518_v16  ;;  %s1101_s21 = scalar_lea.hbm %s1100_s3, 4  ;;  %p1106_p1 = scmp.lt.s32.totalorder %s1100_s3, %s1500_s7 }
  0xd9   : > { %p1102_p12 = scmp.ne.s32.totalorder %s1100_s3, %s1101_s21  ;;  %p1107_p2 = scmp.lt.s32.totalorder %s1105_s8, %s1101_s21 }
  0xdb   : > { %p1103_p13 = pnand %p1102_p12, %p1276_p8  ;;  %p1108_p4 = por %p1107_p2, %p1106_p1 }
  0xdd   : > { %p1104_p0 = pneg %p1103_p13 }
  0xdf   : > { %p1109_p5 = pnand %p1108_p4, %p1104_p0 }
  0xe1   : > { %1112 = shalt.err (!%p1109_p5)
}
  0xe2   : > { %825 = dma.vmem_to_hbm [thread:$0]  (%p1276_p8), %s578_s18, 64, %s580_s19, %s1423_s11  }
  0xe3 PF: > { %s1530_s15 = sld [smem:[#allocation19_spill]]  ;;  %p844_p3 = pnand %p787_p10, %p1283_p9 }
  0xe4   : > { %s1532_s24 = sld [smem:[#allocation21_spill]] }
  0xe5   : > { %p845_p6 = pneg %p844_p3 }
  0xe9   : > { %s591_s17 = sand.u32 1, %s1530_s15  }
  0xea   : > { %s592_s30 = scalar_lea.sflag [#allocation4], %s591_s17 }
  0xeb   : > { %1150 = dma.done.wait (%p845_p6), %s592_s30, 64  }
  0xec   : > { %1152 = vsyncadd (%p845_p6), %s592_s30, 4294967232  ;;  %s1533_s29 = sadd.s32 4294967294, %s1532_s24  }
  0xed   : > { %s601_s22 = sand.u32 1, %s1533_s29  }
  0xee   : > { %s602_s9 = scalar_lea.sflag [#allocation12], %s601_s22 }
  0xef   : > { %1154 = dma.done.wait (%p845_p6), %s602_s9, 128  }
  0xf0   : > { %1156 = vsyncadd (%p845_p6), %s602_s9, 4294967168  ;;  %s31_s29 = sadd.s32 1, %s1532_s24   ;;  %s1534_s14 = sld [smem:[#allocation25_spill]] }
  0xf1   : > { %p28_p8 = scmp.ge.s32.totalorder %s31_s29, 4   ;;  %s1535_s27 = sld [smem:[#allocation20_spill]] }
  0xf2   : > { %s1536_s28 = sld [smem:[#allocation22_spill]]  ;;  %s1537_s24 = smov %s1163_s25 }
  0xf3   : > { %s1538_s25 = smov %s1167_s26  ;;  %30 = sbr.rel (!%p28_p8) target bundleno = 14 (0xe), region = 145 }
  0xf6   : > { %s1539_s26 = smov %s1534_s14 }
  0xf8   :  { %618 = vsyncpa [#allocation3], 1 }
  0xf9   :  { %620 = vsyncpa [#allocation3 + $0x1], 1 }
  0xfa   :  { %621 = vsyncpa [#allocation6], 1 }
  0xfb   :  { %623 = vsyncpa [#allocation6 + $0x1], 1 }
  0xfc   :  { %624 = vsyncpa [#allocation9], 1 }
  0xfd   :  { %625 = vsyncpa [#allocation4], 1 }
  0xfe   :  { %627 = vsyncpa [#allocation4 + $0x1], 1 }
  0xff   :  { %628 = vsyncpa [#allocation12], 1 }
 0x100   :  { %630 = vsyncpa [#allocation12 + $0x1], 1 }

</bundles_post_ra>
